<compile_context>
chip_gen: v5e
topology: v5e:2x2
jax: 0.10.0
libtpu: 0.0.40
codegen_flags: <defaults>
</compile_context>

<pallas_src>
import functools

import jax
import jax.numpy as jnp
from jax.experimental import pallas as pl
from jax.experimental.pallas import tpu as pltpu


def cas_kernel(x_ref, w_ref, b_ref, wcls_ref, out_ref, feat_ref, *, seq_len):
    x = x_ref[...]                                  # (R, C), R = B*T

    # Shifted rows via XLU roll; zero the rows that wrapped across a sequence
    # (= batch) boundary -- exactly the rows Conv1d's zero padding would zero.
    row = jax.lax.broadcasted_iota(jnp.int32, x.shape, 0)
    t = row % seq_len
    x_prev = jnp.where(t == 0, 0.0, pltpu.roll(x, shift=1, axis=0))
    x_next = jnp.where(t == seq_len - 1, 0.0,
                       pltpu.roll(x, shift=x.shape[0] - 1, axis=0))

    # Fused conv: one (R, 3C) x (3C, C) MXU matmul + bias, then ReLU.
    xin = jnp.concatenate([x_prev, x, x_next], axis=-1)      # (R, 3C)
    h = jnp.dot(xin, w_ref[...], preferred_element_type=jnp.float32) + b_ref[...]
    feat = jnp.maximum(h, 0.0)

    # TODO(synk): Dropout(p=0.7) is identity in eval mode; a training-mode
    # path would need pltpu.prng_seed / pltpu.prng_random_bits masking.
    # Classifier is bias-free per the module spec (Conv1d(..., bias=False)).
    out = jnp.dot(feat, wcls_ref[...], preferred_element_type=jnp.float32)

    out_ref[...] = out.astype(out_ref.dtype)        # lane-dense (R, 128) store
    feat_ref[...] = feat.astype(feat_ref.dtype)


def cas_forward(x, conv_w, conv_b, cls_w):
    """x: (B, T, C) f32; conv_w: (C, C, 3); conv_b: (C,); cls_w: (NC, C, 1)."""
    B, T, C = x.shape
    NC = cls_w.shape[0]
    NC_pad = max(128, ((NC + 127) // 128) * 128)    # lane-dense classifier out

    # Weight prep (plain JAX glue): Conv1d tap k multiplies x[t + k - 1], so
    # stack the per-tap (C_in, C_out) matrices into one (3C, C) matmul weight.
    w_stacked = jnp.concatenate(
        [jnp.transpose(conv_w[:, :, 0]),            # multiplies x[t-1]
         jnp.transpose(conv_w[:, :, 1]),            # multiplies x[t]
         jnp.transpose(conv_w[:, :, 2])],           # multiplies x[t+1]
        axis=0)                                     # (3C, C)
    b = conv_b.reshape(1, C)
    wcls = jnp.transpose(cls_w[:, :, 0])            # (C, NC)
    wcls_pad = jnp.zeros((C, NC_pad), wcls.dtype).at[:, :NC].set(wcls)

    x2 = x.reshape(B * T, C)                        # fold B into the row axis

    out_pad, feat2 = pl.pallas_call(
        functools.partial(cas_kernel, seq_len=T),
        out_shape=(jax.ShapeDtypeStruct((B * T, NC_pad), x.dtype),
                   jax.ShapeDtypeStruct((B * T, C), x.dtype)),
        in_specs=[
            pl.BlockSpec(memory_space=pltpu.MemorySpace.VMEM),  # x
            pl.BlockSpec(memory_space=pltpu.MemorySpace.VMEM),  # stacked conv w
            pl.BlockSpec(memory_space=pltpu.MemorySpace.VMEM),  # bias
            pl.BlockSpec(memory_space=pltpu.MemorySpace.VMEM),  # padded cls w
        ],
        out_specs=(
            pl.BlockSpec(memory_space=pltpu.MemorySpace.VMEM),
            pl.BlockSpec(memory_space=pltpu.MemorySpace.VMEM),
        ),
    )(x2, w_stacked, b, wcls_pad)

    out = out_pad[:, :NC].reshape(B, T, NC)
    feat = feat2.reshape(B, T, C)
    return out, feat


def cas_reference(x, conv_w, conv_b, cls_w):
    """Pure-JAX reference matching PyTorch eval-mode semantics."""
    B, T, C = x.shape
    zeros_row = jnp.zeros((B, 1, C), x.dtype)
    x_prev = jnp.concatenate([zeros_row, x[:, :-1, :]], axis=1)
    x_next = jnp.concatenate([x[:, 1:, :], zeros_row], axis=1)
    wl = jnp.transpose(conv_w[:, :, 0])
    wc = jnp.transpose(conv_w[:, :, 1])
    wr = jnp.transpose(conv_w[:, :, 2])
    h = (jnp.einsum('btc,cd->btd', x_prev, wl)
         + jnp.einsum('btc,cd->btd', x, wc)
         + jnp.einsum('btc,cd->btd', x_next, wr)
         + conv_b[None, None, :])
    feat = jnp.maximum(h, 0.0)
    out = jnp.einsum('btc,cn->btn', feat, jnp.transpose(cls_w[:, :, 0]))
    return out, feat


if __name__ == "__main__":
    # Small shapes consistent with the module: len_feature=32, num_classes=4,
    # batch=2, temporal length=8.  Input is (B, T, len_feature) as expected by
    # the PyTorch forward (which permutes to channels-first internally).
    B, T, C, NC = 2, 8, 32, 4

    key = jax.random.PRNGKey(0)
    k_x, k_w1, k_b1, k_w2 = jax.random.split(key, 4)

    x = jax.random.normal(k_x, (B, T, C), dtype=jnp.float32)
    conv_w = jax.random.normal(k_w1, (C, C, 3), dtype=jnp.float32) * 0.05
    conv_b = jax.random.normal(k_b1, (C,), dtype=jnp.float32) * 0.05
    cls_w = jax.random.normal(k_w2, (NC, C, 1), dtype=jnp.float32) * 0.05

    out, feat = cas_forward(x, conv_w, conv_b, cls_w)
    jax.block_until_ready((out, feat))

    out_ref, feat_ref = cas_reference(x, conv_w, conv_b, cls_w)
    assert out.shape == (B, T, NC) and feat.shape == (B, T, C)
    assert jnp.allclose(out, out_ref, atol=1e-4, rtol=1e-4)
    assert jnp.allclose(feat, feat_ref, atol=1e-4, rtol=1e-4)

    print("KERNEL_OK")
</pallas_src>

<mosaic_0001>
module attributes {stable_mosaic.version = 11 : i64} {
  func.func @cas_kernel(%arg0: memref<16x32xf32, #tpu.memory_space<vmem>>, %arg1: memref<96x32xf32, #tpu.memory_space<vmem>>, %arg2: memref<1x32xf32, #tpu.memory_space<vmem>>, %arg3: memref<32x128xf32, #tpu.memory_space<vmem>>, %arg4: memref<16x128xf32, #tpu.memory_space<vmem>>, %arg5: memref<16x32xf32, #tpu.memory_space<vmem>>) attributes {dimension_semantics = [], scalar_prefetch = 0 : i64, scratch_operands = 0 : i64, tpu.core_type = #tpu.core_type<tc>} {
    %c0 = arith.constant 0 : index
    %c0_0 = arith.constant 0 : index
    %0 = vector.load %arg0[%c0, %c0_0] : memref<16x32xf32, #tpu.memory_space<vmem>>, vector<16x32xf32>
    %1 = tpu.iota {dimensions = array<i32: 0>} : vector<16x32xi32>
    %c8_i32 = arith.constant 8 : i32
    %c0_i32 = arith.constant 0 : i32
    %2 = arith.cmpi eq, %c8_i32, %c0_i32 : i32
    %c1_i32 = arith.constant 1 : i32
    %3 = arith.select %2, %c1_i32, %c8_i32 : i32
    %4 = vector.broadcast %3 : i32 to vector<16x32xi32>
    %5 = arith.remsi %1, %4 : vector<16x32xi32>
    %c0_i32_1 = arith.constant 0 : i32
    %6 = vector.broadcast %c0_i32_1 : i32 to vector<16x32xi32>
    %7 = arith.cmpi ne, %5, %6 : vector<16x32xi32>
    %c0_i32_2 = arith.constant 0 : i32
    %8 = vector.broadcast %c0_i32_2 : i32 to vector<16x32xi32>
    %9 = arith.cmpi slt, %5, %8 : vector<16x32xi32>
    %c0_i32_3 = arith.constant 0 : i32
    %10 = arith.cmpi slt, %3, %c0_i32_3 : i32
    %11 = vector.broadcast %10 : i1 to vector<16x32xi1>
    %12 = vector.broadcast %11 : vector<16x32xi1> to vector<16x32xi1>
    %13 = arith.xori %9, %12 : vector<16x32xi1>
    %14 = arith.andi %13, %7 : vector<16x32xi1>
    %15 = vector.broadcast %3 : i32 to vector<16x32xi32>
    %16 = arith.addi %5, %15 : vector<16x32xi32>
    %17 = arith.select %14, %16, %5 : vector<16x32xi1>, vector<16x32xi32>
    %c0_i32_4 = arith.constant 0 : i32
    %18 = vector.broadcast %c0_i32_4 : i32 to vector<16x32xi32>
    %19 = arith.cmpi eq, %17, %18 : vector<16x32xi32>
    %c1_i32_5 = arith.constant 1 : i32
    %20 = tpu.dynamic_rotate %0 by %c1_i32_5 dim 0 : vector<16x32xf32>, i32 -> vector<16x32xf32>
    %cst = arith.constant 0.000000e+00 : f32
    %21 = vector.broadcast %cst : f32 to vector<16x32xf32>
    %22 = arith.select %19, %21, %20 : vector<16x32xi1>, vector<16x32xf32>
    %c7_i32 = arith.constant 7 : i32
    %23 = vector.broadcast %c7_i32 : i32 to vector<16x32xi32>
    %24 = arith.cmpi eq, %17, %23 : vector<16x32xi32>
    %c15_i32 = arith.constant 15 : i32
    %25 = tpu.dynamic_rotate %0 by %c15_i32 dim 0 : vector<16x32xf32>, i32 -> vector<16x32xf32>
    %cst_6 = arith.constant 0.000000e+00 : f32
    %26 = vector.broadcast %cst_6 : f32 to vector<16x32xf32>
    %27 = arith.select %24, %26, %25 : vector<16x32xi1>, vector<16x32xf32>
    %28 = tpu.concatenate %22, %0, %27 in 1 : vector<16x32xf32>, vector<16x32xf32>, vector<16x32xf32> -> vector<16x96xf32>
    %c0_7 = arith.constant 0 : index
    %c0_8 = arith.constant 0 : index
    %29 = vector.load %arg1[%c0_7, %c0_8] : memref<96x32xf32, #tpu.memory_space<vmem>>, vector<96x32xf32>
    %cst_9 = arith.constant dense<0.000000e+00> : vector<16x32xf32>
    %30 = tpu.matmul %28, %29, %cst_9 {dimension_numbers = #tpu.dot_dimension_numbers<[1], [0], [0], [1], [0, 0, 1, 1], [], []>} : vector<16x96xf32>, vector<96x32xf32>, vector<16x32xf32> -> vector<16x32xf32>
    %c0_10 = arith.constant 0 : index
    %c0_11 = arith.constant 0 : index
    %31 = vector.load %arg2[%c0_10, %c0_11] : memref<1x32xf32, #tpu.memory_space<vmem>>, vector<1x32xf32>
    %32 = vector.broadcast %31 : vector<1x32xf32> to vector<16x32xf32>
    %33 = arith.addf %30, %32 : vector<16x32xf32>
    %cst_12 = arith.constant 0.000000e+00 : f32
    %34 = vector.broadcast %cst_12 : f32 to vector<16x32xf32>
    %35 = arith.maximumf %33, %34 : vector<16x32xf32>
    %c0_13 = arith.constant 0 : index
    %c0_14 = arith.constant 0 : index
    %36 = vector.load %arg3[%c0_13, %c0_14] : memref<32x128xf32, #tpu.memory_space<vmem>>, vector<32x128xf32>
    %cst_15 = arith.constant dense<0.000000e+00> : vector<16x128xf32>
    %37 = tpu.matmul %35, %36, %cst_15 {dimension_numbers = #tpu.dot_dimension_numbers<[1], [0], [0], [1], [0, 0, 1, 1], [], []>} : vector<16x32xf32>, vector<32x128xf32>, vector<16x128xf32> -> vector<16x128xf32>
    %c0_16 = arith.constant 0 : index
    %c0_17 = arith.constant 0 : index
    %38 = vector.load %arg4[%c0_16, %c0_17] : memref<16x128xf32, #tpu.memory_space<vmem>>, vector<16x128xf32>
    tpu.vector_store %arg4[%c0_16, %c0_17], %37 {strides = array<i32>} : memref<16x128xf32, #tpu.memory_space<vmem>>, vector<16x128xf32>,
    %c0_18 = arith.constant 0 : index
    %c0_19 = arith.constant 0 : index
    %39 = vector.load %arg5[%c0_18, %c0_19] : memref<16x32xf32, #tpu.memory_space<vmem>>, vector<16x32xf32>
    tpu.vector_store %arg5[%c0_18, %c0_19], %35 {strides = array<i32>} : memref<16x32xf32, #tpu.memory_space<vmem>>, vector<16x32xf32>,
    return
  }
}

</mosaic_0001>

<bundles_post_ra>
// kernel: tpu_custom_call.1
= control target key start
LH: loop header
LB: loop body
LE: loop exit
PB: predicated region body
PF: predicated region fallthrough
CT: control target
= control target key end

     0   :  { %11 = vsyncpa [#allocation3], 0  ;;  %v23_v2 = vlaneseq  ;;  %s286_s24 = smov 32   ;;  %s397_s0 = inlined_call_operand.vmem [shape: f32[16,32], index: 0, kind: input, shape index: {}]   ;;  %s398_s1 = inlined_call_operand.vmem [shape: f32[96,32], index: 1, kind: input, shape index: {}]   ;;  %s399_s2 = inlined_call_operand.vmem [shape: f32[1,32], index: 2, kind: input, shape index: {}]   ;;  %s400_s3 = inlined_call_operand.vmem [shape: f32[32,128], index: 3, kind: input, shape index: {}]   ;;  %s401_s4 = inlined_call_operand.hbm [shape: f32[16,128], index: 4, kind: output, shape index: {0}]   ;;  %s402_s5 = inlined_call_operand.hbm [shape: f32[16,32], index: 5, kind: output, shape index: {1}]  }
   0x1   :  { %v21_v0 = vld [vmem:[%s397_s0] sm:$0xff]  ;;  %v22_v1 = vld [vmem:[%s397_s0 + $0x8] sm:$0xff]  ;;  %v101_v3 = vld [vmem:[%s398_s1 + $0x58] sm:$0xff] }
   0x2   :  { %70 = vrot.lane.b32.xlu0 %v21_v0, %s286_s24  ;;  %v61_v4 = vrot.slane %v21_v0, 1  ;;  %72 = vrot.lane.b32.xlu1 %v22_v1, %s286_s24  ;;  %v62_v5 = vrot.slane %v22_v1, 1  ;;  %v100_v6 = vld [vmem:[%s398_s1 + $0x50] sm:$0xff]  ;;  %v24_v7 = vshrl.u32 %v23_v2, 7  ;;  %v99_v8 = vld [vmem:[%s398_s1 + $0x48] sm:$0xff] }
   0x3   :  { %117 = vmatpush.msra.mxu0 %v101_v3  ;;  %215 = vmatpush.msra.mxu2 %v101_v3 }
   0x4   :  { %12 = vsyncpa [#allocation5], 0  ;;  %v30_v9 = vand.u32 7, %v24_v7  ;;  %vm63_vm0 = vcmp.lt.s32.totalorder %v24_v7, 7  ;;  %v25_v10 = vadd.s32 8, %v24_v7  ;;  %v98_v12 = vld [vmem:[%s398_s1 + $0x40] sm:$0xff] }
   0x5   :  { %118 = vmatpush.msra.mxu0 %v100_v6  ;;  %216 = vmatpush.msra.mxu2 %v100_v6  ;;  %v64_v11 = vsel %vm63_vm0, %v61_v4, %v62_v5  ;;  %v65_v14 = vsel %vm63_vm0, %v62_v5, %v61_v4  ;;  %v97_v16 = vld [vmem:[%s398_s1 + $0x38] sm:$0xff]  ;;  %s287_s7 = smov 64   ;;  %v96_v18 = vld [vmem:[%s398_s1 + $0x30] sm:$0xff]  ;;  %v95_v19 = vld [vmem:[%s398_s1 + $0x28] sm:$0xff]  ;;  %v52_v20 = vrot.slane %v21_v0, 7  ;;  %v53_v21 = vrot.slane %v22_v1, 7 }
   0x6   :  { %vm59_vm1 = vcmp.eq.s32.totalorder %v30_v9, 7  ;;  %v37_v13 = vand.u32 7, %v25_v10  ;;  %vm54_vm3 = vcmp.lt.s32.totalorder %v24_v7, 1  ;;  %vm349_vm4 = vcmp.eq.s32.totalorder %v30_v9, 0  ;;  %v94_v25 = vld [vmem:[%s398_s1 + $0x20] sm:$0xff]  ;;  %v93_v27 = vld [vmem:[%s398_s1 + $0x18] sm:$0xff] }
   0x7   :  { %119 = vmatpush.msra.mxu0 %v99_v8  ;;  %217 = vmatpush.msra.mxu2 %v99_v8  ;;  %v66_v15 = vsel %vm59_vm1, 0.0, %v64_v11  ;;  %v56_v23 = vsel %vm54_vm3, %v53_v21, %v52_v20  ;;  %v55_v26 = vsel %vm54_vm3, %v52_v20, %v53_v21  ;;  %v92_v28 = vld [vmem:[%s398_s1 + $0x10] sm:$0xff]  ;;  %v91_v29 = vld [vmem:[%s398_s1 + $0x8] sm:$0xff]  ;;  %v90_v30 = vld [vmem:[%s398_s1] sm:$0xff]  ;;  %vm84_vm6 = vcmask 261120   ;;  %s289_s8 = smov 128  }
   0x8   :  { %vm60_vm2 = vcmp.eq.s32.totalorder %v37_v13, 7  ;;  %v57_v24 = vsel %vm349_vm4, 0.0, %v56_v23  ;;  %v141_v31 = vld [vmem:[%s400_s3 + $0x18] sm:$0xff]  ;;  %vm51_vm5 = vcmp.eq.s32.totalorder %v37_v13, 0  ;;  %vm87_vm7 = vcmask 523264   ;;  %v140_v41 = vld [vmem:[%s400_s3 + $0x10] sm:$0xff] }
   0x9   :  { %120 = vmatpush.msra.mxu0 %v98_v12  ;;  %218 = vmatpush.msra.mxu2 %v98_v12  ;;  %v67_v17 = vsel %vm60_vm2, 0.0, %v65_v14  ;;  %v58_v34 = vsel %vm51_vm5, 0.0, %v55_v26  ;;  %vm106_vm8 = vcmask 785408   ;;  %v139_v42 = vld [vmem:[%s400_s3 + $0x8] sm:$0xff]  ;;  %v138_v43 = vld [vmem:[%s400_s3] sm:$0xff]  ;;  %s288_s3 = smov [#allocation4]  }
   0xa   :  { %78 = vrot.lane.b32.xlu0 %v66_v15, %s287_s7  ;;  %80 = vrot.lane.b32.xlu1 %v67_v17, %s287_s7  ;;  %v233_v44 = vld [vmem:[%s399_s2] ss:$0 sm:$0xff]  ;;  %s192_s30 = sshll.u32 %s288_s3, 4  ;;  %s194_s2 = sshll.u32 %s402_s5, 4  ;;  %s193_s30 = int_to_ptr.vmem [resolvable:$true] %s192_s30  ;;  %s195_s2 = int_to_ptr.hbm [resolvable:$true] %s194_s2 }
   0xb   :  { %121 = vmatpush.msra.mxu0 %v97_v16  ;;  %219 = vmatpush.msra.mxu2 %v97_v16  ;;  %s290_s9 = smov 8   ;;  %s291_s10 = smov [#allocation2]  }
   0xc   :  { %160 = vmatpush.msra.mxu1 %v141_v31  ;;  %s179_s11 = sshll.u32 %s291_s10, 4  ;;  %s181_s14 = sshll.u32 %s401_s4, 4  ;;  %s180_s11 = int_to_ptr.vmem [resolvable:$true] %s179_s11  ;;  %s182_s14 = int_to_ptr.hbm [resolvable:$true] %s181_s14 }
   0xd   :  { %122 = vmatpush.msra.mxu0 %v96_v18  ;;  %220 = vmatpush.msra.mxu2 %v96_v18 }
   0xe   :  { %161 = vmatpush.msra.mxu1 %v140_v41 }
   0xf   :  { %123 = vmatpush.msra.mxu0 %v95_v19  ;;  %221 = vmatpush.msra.mxu2 %v95_v19 }
  0x10   :  { %162 = vmatpush.msra.mxu1 %v139_v42 }
  0x11   :  { %124 = vmatpush.msra.mxu0 %v94_v25  ;;  %222 = vmatpush.msra.mxu2 %v94_v25 }
  0x12   :  { %163 = vmatpush.msra.mxu1 %v138_v43 }
  0x13   :  { %125 = vmatpush.msra.mxu0 %v93_v27  ;;  %223 = vmatpush.msra.mxu2 %v93_v27 }
  0x15   :  { %126 = vmatpush.msra.mxu0 %v92_v28  ;;  %224 = vmatpush.msra.mxu2 %v92_v28 }
  0x17   :  { %127 = vmatpush.msra.mxu0 %v91_v29  ;;  %225 = vmatpush.msra.mxu2 %v91_v29 }
  0x19   :  { %128 = vmatpush.msra.mxu0 %v90_v30  ;;  %226 = vmatpush.msra.mxu2 %v90_v30 }
  0x74   :  { %v71_v32 = vpop.permute.xlu0 %70  ;;  %v73_v33 = vpop.permute.xlu1 %72 }
  0x75   :  { %v85_v35 = vsel %vm84_vm6, %v57_v24, %v71_v32  ;;  %v86_v37 = vsel %vm84_vm6, %v58_v34, %v73_v33 }
  0x7c   :  { %v79_v36 = vpop.permute.xlu0 %78  ;;  %v81_v38 = vpop.permute.xlu1 %80 }
  0x7d   :  { %v88_v39 = vsel %vm87_vm7, %v85_v35, %v79_v36  ;;  %v89_v40 = vsel %vm87_vm7, %v86_v37, %v81_v38 }
  0x7e   :  { %211 = vmatmul.msk.f32.vlgmr.msra.gmra.mxu0 %vm106_vm8, %v88_v39  ;;  %212 = vmatmul.msk.f32.vlgmr.msra.gmra.mxu2 %vm106_vm8, %v89_v40 }
  0xfb   :  { %v130_v45 = vpop.f32.mrf.mxu0 }
  0xfc   :  { %v131_v46 = vadd.f32 %v233_v44, %v130_v45 }
  0xfe   :  { %v136_v47 = vmax.f32 %v131_v46, 0.0 }
 0x100   :  { %173 = vst.msk [vmem:[#allocation4] sm:$0xff] %vm84_vm6, %v136_v47  ;;  %213 = vmatmul.msk.f32.vlgmr.msra.gmra.mxu1 %vm84_vm6, %v136_v47 }
 0x101   :  { %v133_v48 = vpop.f32.mrf.mxu2 }
 0x102   :  { %v134_v49 = vadd.f32 %v233_v44, %v133_v48 }
 0x104   :  { %v137_v50 = vmax.f32 %v134_v49, 0.0 }
 0x106   :  { %174 = vst.msk [vmem:[#allocation4 + $0x8] sm:$0xff] %vm84_vm6, %v137_v50 }
 0x107   :  { %200 = dma.vmem_to_hbm [thread:$0]  %s193_s30, 256, %s195_s2, [#allocation5], %s289_s8, %s289_s8, %s290_s9  }
 0x108   :  { %214 = vmatmul.msk.f32.gmra.mxu1 %vm84_vm6, %v137_v50 }
 0x17d   :  { %v165_v51 = vpop.f32.mrf.mxu1 }
 0x17e   :  { %171 = vst [vmem:[#allocation2] sm:$0xff] %v165_v51 }
 0x185   :  { %v168_v52 = vpop.f32.mrf.mxu1 }
 0x186   :  { %172 = vst [vmem:[#allocation2 + $0x8] sm:$0xff] %v168_v52 }
 0x187   :  { %187 = dma.vmem_to_hbm [thread:$0]  %s180_s11, 256, %s182_s14, [#allocation3], %s289_s8, %s289_s8, %s290_s9  }
 0x188   :  { %282 = dma.done.wait [#allocation3], 256  }
 0x189   :  { %283 = vsyncadd [#allocation3], 4294967040 }
 0x18a   :  { %284 = dma.done.wait [#allocation5], 256  }
 0x18b   :  { %285 = vsyncadd [#allocation5], 4294967040 }
 0x18c   :  { %209 = vsyncpa [#allocation3], 1 }
 0x18d   :  { %210 = vsyncpa [#allocation5], 1 }

</bundles_post_ra>
